<compile_context>
chip_gen: v7x
topology: tpu7x:2x2x1
jax: 0.10.0
libtpu: 0.0.40
codegen_flags: <defaults>
</compile_context>

<pallas_src>
import numpy as np

import jax
import jax.numpy as jnp
from jax.experimental import pallas as pl
from jax.experimental.pallas import tpu as pltpu

EPS = 1e-5  # nn.InstanceNorm2d default eps


def _ginka_upsample_kernel(x_ref, w_ref, o_ref):
    # x_ref: (B, Cin, HW)       compute dtype (bf16), spatial axis lane-dense
    # w_ref: (4*Coutp, Cin)     compute dtype, row = (2*kh + kw)*Coutp + c
    # o_ref: (B, 4*Coutp, HW)   out dtype
    bblk = x_ref.shape[0]
    hw = x_ref.shape[2]
    coutp = w_ref.shape[0] // 4

    w = w_ref[...]
    for b in range(bblk):  # static unroll; bblk is small (batch folding)
        x = x_ref[b]  # (Cin, HW)

        # All four (kh, kw) sub-grids of the k=2/s=2 transposed conv in one MXU matmul.
        # Bias omitted on purpose: cancelled by the affine=False InstanceNorm below.
        y = jnp.dot(w, x, preferred_element_type=jnp.float32)  # (4*Coutp, HW) f32

        # InstanceNorm2d over the full 2H x 2W output per channel c: rows
        # {k*Coutp + c, k=0..3} all belong to channel c.  Coutp % 8 == 0 keeps this
        # reshape sublane-aligned (layout-free).
        y4 = y.reshape(4, coutp, hw)
        mean = jnp.mean(y4, axis=(0, 2), keepdims=True)                    # (1,Coutp,1)
        var = jnp.mean(jnp.square(y4 - mean), axis=(0, 2), keepdims=True)  # (1,Coutp,1)
        yn = (y4 - mean) * jax.lax.rsqrt(var + EPS)

        # ELU(alpha=1).  exp argument clamped at 0 so the unselected branch stays
        # finite; forward-only (a custom VJP would be needed to differentiate safely).
        out = jnp.where(yn > 0, yn, jnp.exp(jnp.minimum(yn, 0.0)) - 1.0)
        o_ref[b] = out.reshape(4 * coutp, hw).astype(o_ref.dtype)


def _round_up(v, m):
    return (v + m - 1) // m * m


def prepare_weights(w_pt, compute_dtype=jnp.bfloat16):
    """One-time ConvTranspose2d weight re-layout (hoisted out of the per-call path).

    w_pt: (Cin, Cout, 2, 2) PyTorch ConvTranspose2d layout.
    Returns (w_cat, cout): w_cat[(2*kh+kw)*Coutp + c, cin] = w_pt[cin, c, kh, kw],
    with Cout zero-padded to Coutp = next multiple of 8.
    """
    cin, cout = int(w_pt.shape[0]), int(w_pt.shape[1])
    coutp = _round_up(cout, 8)
    t = jnp.transpose(w_pt, (2, 3, 1, 0))  # (2, 2, Cout, Cin)
    if coutp != cout:
        t = jnp.pad(t, ((0, 0), (0, 0), (0, coutp - cout), (0, 0)))
    return t.reshape(4 * coutp, cin).astype(compute_dtype), cout


def ginka_upsample(x_nchw, w_cat, cout, *, compute_dtype=jnp.bfloat16,
                   out_dtype=jnp.float32, vmem_target_bytes=4 << 20):
    """ConvTranspose2d(Cin, Cout, 2, stride=2) -> InstanceNorm2d -> ELU.

    x_nchw: (N, Cin, H, W); w_cat: output of prepare_weights().  The ConvTranspose2d
    bias is mathematically dead under affine=False InstanceNorm and is not taken.
    Returns (N, Cout, 2H, 2W) in out_dtype, matching the PyTorch module.
    """
    n, cin, h, w = x_nchw.shape
    hw = h * w
    coutp = w_cat.shape[0] // 4
    assert w_cat.shape[1] == cin

    # Channel-major, lane-dense input: free reshape, no HBM transpose.
    # TODO(synk): pad HW to a multiple of 128 (with masked stats) when H*W % 128 != 0.
    x = x_nchw.reshape(n, cin, hw).astype(compute_dtype)

    # ---- block / grid sizing -------------------------------------------------
    in_bytes_1 = cin * hw * np.dtype(compute_dtype).itemsize
    out_bytes_1 = 4 * coutp * hw * np.dtype(out_dtype).itemsize
    per_sample = in_bytes_1 + out_bytes_1
    bblk = max(1, min(n, vmem_target_bytes // max(per_sample, 1)))
    if n >= 2 and bblk >= n:
        bblk = (n + 1) // 2  # keep >=2 parallel grid steps so both v7x TCs get work
    while n % bblk:          # exact tiling (avoid out-of-bounds batch reads)
        bblk -= 1
    grid = (n // bblk,)

    w_bytes = int(np.prod(w_cat.shape)) * np.dtype(compute_dtype).itemsize
    need = 2 * bblk * per_sample + w_bytes  # double-buffered in/out blocks + weight
    if need > 56 << 20:
        # TODO(synk): HW-tile grid axis + two-pass InstanceNorm for images that do not
        # fit VMEM (v7x has only 64 MiB physical).
        raise NotImplementedError(
            f"GinkaUpSample block needs ~{need >> 20} MiB VMEM; add HW tiling.")
    vmem_limit = int(min(100 << 20, max(32 << 20, need + (8 << 20))))

    out = pl.pallas_call(
        _ginka_upsample_kernel,
        out_shape=jax.ShapeDtypeStruct((n, 4 * coutp, hw), out_dtype),
        grid_spec=pltpu.PrefetchScalarGridSpec(
            num_scalar_prefetch=0,
            grid=grid,
            in_specs=[
                pl.BlockSpec((bblk, cin, hw), lambda i: (i, 0, 0)),
                pl.BlockSpec((4 * coutp, cin), lambda i: (0, 0)),
            ],
            out_specs=pl.BlockSpec((bblk, 4 * coutp, hw), lambda i: (i, 0, 0)),
        ),
        compiler_params=pltpu.CompilerParams(
            dimension_semantics=("parallel",),
            vmem_limit_bytes=vmem_limit,
        ),
    )(x, w_cat)

    # Sub-grid interleave back to full-resolution NCHW (layout-only glue; see TODO).
    out = out.reshape(n, 2, 2, coutp, h, w)[:, :, :, :cout]  # (n, kh, kw, c, i, j)
    out = jnp.transpose(out, (0, 3, 4, 1, 5, 2))             # (n, c, i, kh, j, kw)
    return out.reshape(n, cout, 2 * h, 2 * w)


def _reference(x_nchw, w_pt, b_pt):
    """Pure-JAX f32 reference of the PyTorch module (bias included to show cancellation)."""
    n, cin, h, w = x_nchw.shape
    cout = w_pt.shape[1]
    # ConvTranspose2d k=2, s=2: out[n,c,2i+kh,2j+kw] = sum_cin x[n,cin,i,j]*w[cin,c,kh,kw]
    y = jnp.einsum("nihw,iokl->nohkwl", x_nchw, w_pt,
                   precision=jax.lax.Precision.HIGHEST)       # (N, Cout, H, 2, W, 2)
    y = y.reshape(n, cout, 2 * h, 2 * w) + b_pt[None, :, None, None]
    mean = jnp.mean(y, axis=(2, 3), keepdims=True)
    var = jnp.mean(jnp.square(y - mean), axis=(2, 3), keepdims=True)
    yn = (y - mean) * jax.lax.rsqrt(var + EPS)
    return jnp.where(yn > 0, yn, jnp.expm1(yn))


if __name__ == "__main__":
    key = jax.random.PRNGKey(0)
    kx, kw_, kb = jax.random.split(key, 3)

    N, Cin, Cout, H, W = 2, 4, 8, 16, 16
    x = jax.random.normal(kx, (N, Cin, H, W), dtype=jnp.float32)
    # nn.ConvTranspose2d(in_ch, out_ch, 2, stride=2): weight (in_ch, out_ch, 2, 2)
    w = jax.random.normal(kw_, (Cin, Cout, 2, 2), dtype=jnp.float32) * 0.1
    b = jax.random.normal(kb, (Cout,), dtype=jnp.float32) * 0.1  # dead under InstanceNorm

    w_cat, cout = prepare_weights(w)  # one-time weight prep (outside the per-call path)
    fn = jax.jit(lambda xx: ginka_upsample(xx, w_cat, cout))

    out = fn(x)
    jax.block_until_ready(out)

    assert out.shape == (N, Cout, 2 * H, 2 * W)
    assert bool(jnp.all(jnp.isfinite(out)))

    ref = _reference(x, w, b)
    # bf16 MXU operands vs f32 reference -> ~1e-2-level differences are expected.
    assert bool(jnp.allclose(out, ref, atol=5e-2, rtol=5e-2)), float(
        jnp.max(jnp.abs(out - ref)))

    print("KERNEL_OK")
</pallas_src>

<mosaic_0001>
module attributes {stable_mosaic.version = 11 : i64} {
  func.func @_ginka_upsample_kernel(%arg0: i32, %arg1: memref<1x4x256xbf16, #tpu.memory_space<vmem>>, %arg2: memref<32x4xbf16, #tpu.memory_space<vmem>>, %arg3: memref<1x32x256xf32, #tpu.memory_space<vmem>>) attributes {dimension_semantics = [#tpu.dimension_semantics<parallel>], iteration_bounds = array<i64: 2>, scalar_prefetch = 0 : i64, scratch_operands = 0 : i64, tpu.core_type = #tpu.core_type<tc>, window_params = [{transform_indices = @transform_0, window_bounds = array<i64: 1, 4, 256>}, {pipeline_mode = #tpu.pipeline_mode<synchronous>, transform_indices = @transform_1, window_bounds = array<i64: 32, 4>}, {transform_indices = @transform_2, window_bounds = array<i64: 1, 32, 256>}]} {
    %c0 = arith.constant 0 : index
    %c0_0 = arith.constant 0 : index
    %0 = vector.load %arg2[%c0, %c0_0] : memref<32x4xbf16, #tpu.memory_space<vmem>>, vector<32x4xbf16>
    %c0_1 = arith.constant 0 : index
    %c0_2 = arith.constant 0 : index
    %c0_3 = arith.constant 0 : index
    %1 = vector.load %arg1[%c0_1, %c0_2, %c0_3] : memref<1x4x256xbf16, #tpu.memory_space<vmem>>, vector<1x4x256xbf16>
    %2 = vector.shape_cast %1 : vector<1x4x256xbf16> to vector<4x256xbf16>
    %cst = arith.constant dense<0.000000e+00> : vector<32x256xf32>
    %3 = tpu.matmul %0, %2, %cst {dimension_numbers = #tpu.dot_dimension_numbers<[1], [0], [0], [1], [0, 0, 1, 1], [], []>} : vector<32x4xbf16>, vector<4x256xbf16>, vector<32x256xf32> -> vector<32x256xf32>
    %4 = vector.shape_cast %3 : vector<32x256xf32> to vector<4x8x256xf32>
    %cst_4 = arith.constant dense<0.000000e+00> : vector<8xf32>
    %5 = vector.multi_reduction <add>, %4, %cst_4 [0, 2] : vector<4x8x256xf32> to vector<8xf32>
    %6 = vector.shape_cast %5 : vector<8xf32> to vector<1x8x1xf32>
    %cst_5 = arith.constant 1.024000e+03 : f32
    %7 = vector.broadcast %cst_5 : f32 to vector<1x8x1xf32>
    %8 = arith.divf %6, %7 : vector<1x8x1xf32>
    %9 = vector.broadcast %8 : vector<1x8x1xf32> to vector<4x8x256xf32>
    %10 = arith.subf %4, %9 : vector<4x8x256xf32>
    %11 = arith.mulf %10, %10 : vector<4x8x256xf32>
    %cst_6 = arith.constant dense<0.000000e+00> : vector<8xf32>
    %12 = vector.multi_reduction <add>, %11, %cst_6 [0, 2] : vector<4x8x256xf32> to vector<8xf32>
    %13 = vector.shape_cast %12 : vector<8xf32> to vector<1x8x1xf32>
    %cst_7 = arith.constant 1.024000e+03 : f32
    %14 = vector.broadcast %cst_7 : f32 to vector<1x8x1xf32>
    %15 = arith.divf %13, %14 : vector<1x8x1xf32>
    %16 = vector.broadcast %8 : vector<1x8x1xf32> to vector<4x8x256xf32>
    %17 = arith.subf %4, %16 : vector<4x8x256xf32>
    %cst_8 = arith.constant 9.99999974E-6 : f32
    %18 = vector.broadcast %cst_8 : f32 to vector<1x8x1xf32>
    %19 = arith.addf %15, %18 : vector<1x8x1xf32>
    %20 = math.rsqrt %19 : vector<1x8x1xf32>
    %21 = vector.broadcast %20 : vector<1x8x1xf32> to vector<4x8x256xf32>
    %22 = arith.mulf %17, %21 : vector<4x8x256xf32>
    %cst_9 = arith.constant 0.000000e+00 : f32
    %23 = vector.broadcast %cst_9 : f32 to vector<4x8x256xf32>
    %24 = arith.cmpf ogt, %22, %23 : vector<4x8x256xf32>
    %cst_10 = arith.constant 0.000000e+00 : f32
    %25 = vector.broadcast %cst_10 : f32 to vector<4x8x256xf32>
    %26 = arith.minimumf %22, %25 : vector<4x8x256xf32>
    %27 = math.exp %26 : vector<4x8x256xf32>
    %cst_11 = arith.constant 1.000000e+00 : f32
    %28 = vector.broadcast %cst_11 : f32 to vector<4x8x256xf32>
    %29 = arith.subf %27, %28 : vector<4x8x256xf32>
    %30 = arith.select %24, %22, %29 : vector<4x8x256xi1>, vector<4x8x256xf32>
    %31 = vector.shape_cast %30 : vector<4x8x256xf32> to vector<32x256xf32>
    %c0_12 = arith.constant 0 : index
    %c0_13 = arith.constant 0 : index
    %c0_14 = arith.constant 0 : index
    %32 = vector.load %arg3[%c0_12, %c0_13, %c0_14] : memref<1x32x256xf32, #tpu.memory_space<vmem>>, vector<1x32x256xf32>
    %33 = vector.shape_cast %32 : vector<1x32x256xf32> to vector<32x256xf32>
    %34 = vector.shape_cast %31 : vector<32x256xf32> to vector<1x32x256xf32>
    tpu.vector_store %arg3[%c0_12, %c0_13, %c0_14], %34 {strides = array<i32>} : memref<1x32x256xf32, #tpu.memory_space<vmem>>, vector<1x32x256xf32>,
    return
  }
  func.func @transform_0(%arg0: i32) -> (i32, i32, i32) {
    %c0_i32 = arith.constant 0 : i32
    %c0_i32_0 = arith.constant 0 : i32
    %c0_i32_1 = arith.constant 0 : i32
    return %arg0, %c0_i32, %c0_i32_0 : i32, i32, i32
  }
  func.func @transform_1(%arg0: i32) -> (i32, i32) {
    %c0_i32 = arith.constant 0 : i32
    %c0_i32_0 = arith.constant 0 : i32
    %c0_i32_1 = arith.constant 0 : i32
    return %c0_i32, %c0_i32_0 : i32, i32
  }
  func.func @transform_2(%arg0: i32) -> (i32, i32, i32) {
    %c0_i32 = arith.constant 0 : i32
    %c0_i32_0 = arith.constant 0 : i32
    %c0_i32_1 = arith.constant 0 : i32
    return %arg0, %c0_i32, %c0_i32_0 : i32, i32, i32
  }
}

</mosaic_0001>

<bundles_post_ra>
// kernel: _lambda_.1
= control target key start
LH: loop header
LB: loop body
LE: loop exit
PB: predicated region body
PF: predicated region fallthrough
CT: control target
= control target key end

     0   :  { %s476_s9 = smov 0   ;;  %s523_s0 = inlined_call_operand.vmem [shape: bf16[2,4,256], index: 0, kind: input, shape index: {}]   ;;  %s524_s1 = inlined_call_operand.vmem [shape: bf16[32,4], index: 1, kind: input, shape index: {}]   ;;  %s525_s2 = inlined_call_operand.vmem [shape: f32[2,32,256], index: 2, kind: output, shape index: {}]  }
   0x1 LB: > { %s394_s10 = sadd.s32 4294967295, %s458_s9   ;;  %p398_p0 = scmp.ge.s32.totalorder %s458_s9, 1  ;;  %s458_s9 = sphi %s476_s9, %s12_s9  }
   0x2   : > { %p112_p1 = scmp.lt.s32.totalorder %s458_s9, 3 }
   0x4   : > { %p113_p2 = pnand %p398_p0, %p112_p1 }
   0x5   : > { %p134_p3 = scmp.lt.s32.totalorder (!%p113_p2), %s394_s10, 1  ;;  %v460_v0 = vmov (!%p113_p2), 0   ;;  %vm176_vm0 = vcmask (!%p113_p2), 1041408   ;;  %v432_v4 = vld [vmem:[%s524_s1] sm:$0xff] (!%p113_p2)   ;;  %v433_v5 = vld [vmem:[%s524_s1 + $0x8] sm:$0xff] (!%p113_p2)   ;;  %vm169_vm1 = vcmask (!%p113_p2), 31744  }
   0x6   : > { %116 = sbr.rel (%p113_p2) target bundleno = 597 (0x255), region = 28  ;;  %215 = vmatprep.mubr.bf16.mxu0 (!%p113_p2), %v460_v0  ;;  %225 = vmatprep.mubr.bf16.mxu1 (!%p113_p2), %v460_v0 }
   0xd   : > { %s527_s10 = smov (!%p134_p3, %s394_s10), 1 }
   0xe   : > { %s419_s11 = sshll.u32 %s527_s10, 2  ;;  %s420_s19 = sshll.u32 %s527_s10, 6 }
   0xf   : > { %s138_s14 = scalar_lea.vmem %s523_s0, %s419_s11  ;;  %s506_s22 = scalar_lea.vmem %s525_s2, %s420_s19 }
  0x10   : > { %v405_v1 = vld.sshfl [vmem:[%s138_s14] sm:$0x33 pattern:$0x76325410] }
  0x11   : > { %v168_v2 = vcombine.high %v405_v1, %v405_v1  ;;  %v178_v3 = vsel %vm176_vm0, %v405_v1, 0 }
  0x13   : > { %406 = vmatprep.subr.msk.bf16.mxu0 %vm176_vm0, %v168_v2  ;;  %421 = vmatprep.subr.msk.bf16.mxu1 %vm176_vm0, %v168_v2 }
  0x14   : > { %184 = vmatpush1.bf16.msra.mxu0 %v178_v3  ;;  %422 = vmatpush1.bf16.msra.mxu1 %v178_v3 }
  0x17   : > { %407 = vmatmul.mubr.msk.bf16.vlgmr.msra.gmra.mrb[0].mxu0 %vm169_vm1, %v432_v4  ;;  %408 = vmatmul.mubr.msk.bf16.vlgmr.msra.gmra.mrb[0].mxu1 %vm169_vm1, %v433_v5 }
  0xea   : > { %v217_v6 = vpop.f32.mrb[0].mxu0  ;;  %v227_v7 = vpop.f32.mrb[0].mxu1 }
  0xeb   : > { %v219_v8 = vpop.f32.mrb[1].mxu0  ;;  %v229_v9 = vpop.f32.mrb[1].mxu1 }
  0xec   : > { %v236_v10 = vadd.f32 %v219_v8, %v217_v6  ;;  %v221_v11 = vpop.f32.mrb[2].mxu0  ;;  %v231_v12 = vpop.f32.mrb[2].mxu1 }
  0xed   : > { %v223_v13 = vpop.f32.mrb[3].mxu0  ;;  %v233_v14 = vpop.f32.mrb[3].mxu1 }
  0xee   : > { %v237_v15 = vadd.f32 %v236_v10, %v221_v11 }
  0xf0   : > { %v238_v16 = vadd.f32 %v237_v15, %v223_v13 }
  0xf2   : > { %v239_v17 = vadd.f32 %v238_v16, %v227_v7 }
  0xf4   : > { %v240_v18 = vadd.f32 %v239_v17, %v229_v9 }
  0xf6   : > { %v241_v19 = vadd.f32 %v240_v18, %v231_v12 }
  0xf8   : > { %v242_v20 = vadd.f32 %v241_v19, %v233_v14 }
  0xfa   : > { %243 = vadd.xlane.f32.xlu0 %v242_v20 }
 0x187   : > { %v244_v21 = vpop.xlane.xlu0 %243 }
 0x188   : > { %v246_v22 = vmul.f32 0.0009765625, %v244_v21 }
 0x18a   : > { %v247_v23 = vsub.f32 %v217_v6, %v246_v22  ;;  %v248_v24 = vsub.f32 %v219_v8, %v246_v22  ;;  %v249_v25 = vsub.f32 %v221_v11, %v246_v22  ;;  %v250_v26 = vsub.f32 %v223_v13, %v246_v22 }
 0x18b   : > { %v251_v29 = vsub.f32 %v227_v7, %v246_v22  ;;  %v252_v32 = vsub.f32 %v229_v9, %v246_v22  ;;  %v253_v35 = vsub.f32 %v231_v12, %v246_v22  ;;  %v254_v38 = vsub.f32 %v233_v14, %v246_v22 }
 0x18c   : > { %v255_v27 = vmul.f32 %v247_v23, %v247_v23  ;;  %v256_v28 = vmul.f32 %v248_v24, %v248_v24  ;;  %v257_v30 = vmul.f32 %v249_v25, %v249_v25  ;;  %v258_v33 = vmul.f32 %v250_v26, %v250_v26 }
 0x18d   : > { %v259_v36 = vmul.f32 %v251_v29, %v251_v29  ;;  %v260_v39 = vmul.f32 %v252_v32, %v252_v32  ;;  %v261_v41 = vmul.f32 %v253_v35, %v253_v35  ;;  %v262_v43 = vmul.f32 %v254_v38, %v254_v38 }
 0x18e   : > { %v263_v31 = vadd.f32 %v256_v28, %v255_v27 }
 0x190   : > { %v264_v34 = vadd.f32 %v263_v31, %v257_v30 }
 0x192   : > { %v265_v37 = vadd.f32 %v264_v34, %v258_v33 }
 0x194   : > { %v266_v40 = vadd.f32 %v265_v37, %v259_v36 }
 0x196   : > { %v267_v42 = vadd.f32 %v266_v40, %v260_v39 }
 0x198   : > { %v268_v44 = vadd.f32 %v267_v42, %v261_v41 }
 0x19a   : > { %v269_v45 = vadd.f32 %v268_v44, %v262_v43 }
 0x19c   : > { %270 = vadd.xlane.f32.xlu0 %v269_v45 }
 0x229   : > { %v271_v46 = vpop.xlane.xlu0 %270 }
 0x22a   : > { %v272_v47 = vmul.f32 0.0009765625, %v271_v46 }
 0x22c   : > { %v273_v48 = vadd.f32 1e-05, %v272_v47 }
 0x22e   : > { %434 = vrsqrt.f32 %v273_v48 }
 0x238   : > { %v435_v49 = vpop.eup %434 }
 0x239   : > { %v275_v50 = vmul.f32 %v435_v49, %v247_v23  ;;  %v276_v51 = vmul.f32 %v435_v49, %v248_v24  ;;  %v277_v52 = vmul.f32 %v435_v49, %v249_v25  ;;  %v278_v53 = vmul.f32 %v435_v49, %v250_v26 }
 0x23a   : > { %v279_v54 = vmul.f32 %v435_v49, %v251_v29  ;;  %v280_v55 = vmul.f32 %v435_v49, %v252_v32  ;;  %v496_v56 = vmul.f32 %v435_v49, %v253_v35  ;;  %v498_v57 = vmul.f32 %v435_v49, %v254_v38 }
 0x23b   : > { %v291_v58 = vmin.f32 %v275_v50, 0.0  ;;  %v292_v59 = vmin.f32 %v276_v51, 0.0  ;;  %v293_v60 = vmin.f32 %v277_v52, 0.0  ;;  %v294_v61 = vmin.f32 %v278_v53, 0.0 }
 0x23c   : > { %v295_v62 = vmin.f32 %v279_v54, 0.0  ;;  %v296_v63 = vmin.f32 %v280_v55, 0.0  ;;  %v297_v0 = vmin.f32 %v496_v56, 0.0  ;;  %v298_v4 = vmin.f32 %v498_v57, 0.0 }
 0x23d   : > { %v299_v1 = vmul.f32 1.442695, %v291_v58  ;;  %v301_v2 = vmul.f32 1.442695, %v292_v59  ;;  %v303_v3 = vmul.f32 1.442695, %v293_v60 }
 0x23e   : > { %v305_v5 = vmul.f32 1.442695, %v294_v61  ;;  %v307_v6 = vmul.f32 1.442695, %v295_v62  ;;  %v309_v7 = vmul.f32 1.442695, %v296_v63 }
 0x23f   : > { %436 = vpow2.f32 %v299_v1  ;;  %v311_v8 = vmul.f32 1.442695, %v297_v0  ;;  %v313_v9 = vmul.f32 1.442695, %v298_v4  ;;  %vm283_vm2 = vcmp.gt.f32.partialorder %v275_v50, 0.0 }
 0x240   : > { %438 = vpow2.f32 %v301_v2  ;;  %vm284_vm3 = vcmp.gt.f32.partialorder %v276_v51, 0.0  ;;  %vm285_vm4 = vcmp.gt.f32.partialorder %v277_v52, 0.0  ;;  %vm286_vm5 = vcmp.gt.f32.partialorder %v278_v53, 0.0 }
 0x241   : > { %440 = vpow2.f32 %v303_v3  ;;  %vm287_vm6 = vcmp.gt.f32.partialorder %v279_v54, 0.0  ;;  %vm288_vm7 = vcmp.gt.f32.partialorder %v280_v55, 0.0  ;;  %vm289_vm8 = vcmp.gt.f32.partialorder %v496_v56, 0.0 }
 0x242   : > { %442 = vpow2.f32 %v305_v5  ;;  %vm290_vm9 = vcmp.gt.f32.partialorder %v498_v57, 0.0 }
 0x243   : > { %444 = vpow2.f32 %v307_v6 }
 0x244   : > { %446 = vpow2.f32 %v309_v7 }
 0x245   : > { %448 = vpow2.f32 %v311_v8 }
 0x246   : > { %450 = vpow2.f32 %v313_v9 }
 0x249   : > { %v437_v10 = vpop.eup %436 }
 0x24a   : > { %v439_v11 = vpop.eup %438  ;;  %v409_v12 = vadd.f32 -1.0, %v437_v10 }
 0x24b   : > { %v441_v13 = vpop.eup %440  ;;  %v410_v14 = vadd.f32 -1.0, %v439_v11 }
 0x24c   : > { %v443_v15 = vpop.eup %442  ;;  %v411_v16 = vadd.f32 -1.0, %v441_v13  ;;  %v323_v17 = vsel %vm283_vm2, %v275_v50, %v409_v12 }
 0x24d   : > { %v445_v18 = vpop.eup %444  ;;  %v412_v19 = vadd.f32 -1.0, %v443_v15  ;;  %v324_v20 = vsel %vm284_vm3, %v276_v51, %v410_v14  ;;  %331 = vst [vmem:[%s506_s22] sm:$0xff] %v323_v17 }
 0x24e   : > { %v447_v21 = vpop.eup %446  ;;  %v413_v22 = vadd.f32 -1.0, %v445_v18  ;;  %v325_v23 = vsel %vm285_vm4, %v277_v52, %v411_v16  ;;  %332 = vst [vmem:[%s506_s22 + $0x8] sm:$0xff] %v324_v20 }
 0x24f   : > { %v449_v24 = vpop.eup %448  ;;  %v414_v25 = vadd.f32 -1.0, %v447_v21  ;;  %v326_v26 = vsel %vm286_vm5, %v278_v53, %v412_v19  ;;  %333 = vst [vmem:[%s506_s22 + $0x10] sm:$0xff] %v325_v23 }
 0x250   : > { %v451_v27 = vpop.eup %450  ;;  %v415_v28 = vadd.f32 -1.0, %v449_v24  ;;  %v327_v29 = vsel %vm287_vm6, %v279_v54, %v413_v22  ;;  %334 = vst [vmem:[%s506_s22 + $0x18] sm:$0xff] %v326_v26 }
 0x251   : > { %v416_v30 = vadd.f32 -1.0, %v451_v27  ;;  %v328_v31 = vsel %vm288_vm7, %v280_v55, %v414_v25  ;;  %335 = vst [vmem:[%s506_s22 + $0x20] sm:$0xff] %v327_v29 }
 0x252   : > { %v329_v32 = vsel %vm289_vm8, %v496_v56, %v415_v28  ;;  %336 = vst [vmem:[%s506_s22 + $0x28] sm:$0xff] %v328_v31 }
 0x253   : > { %v330_v33 = vsel %vm290_vm9, %v498_v57, %v416_v30  ;;  %337 = vst [vmem:[%s506_s22 + $0x30] sm:$0xff] %v329_v32 }
 0x254   : > { %338 = vst [vmem:[%s506_s22 + $0x38] sm:$0xff] %v330_v33 }
 0x255 PF: > { %s12_s9 = sadd.s32 1, %s458_s9  }
 0x256   : > { %p9_p4 = scmp.ge.s32.totalorder %s12_s9, 4  }
 0x258   :  { %11 = sbr.rel (!%p9_p4) target bundleno = 1 (0x1), region = 58 }

</bundles_post_ra>
